<compile_context>
chip_gen: v7x
topology: tpu7x:2x2x1
jax: 0.10.0
libtpu: 0.0.40
codegen_flags: <defaults>
</compile_context>

<pallas_src>
import functools

import jax
import jax.numpy as jnp
from jax.experimental import pallas as pl
from jax.experimental.pallas import tpu as pltpu


def _round_up(x, m):
    return ((x + m - 1) // m) * m


def _patch_embed_kernel(x_ref, w_ref, b_ref, o_ref):
    # x_ref: (tm, K) patch rows; w_ref: (K, tn); b_ref: (1, tn) f32; o_ref: (tm, tn)
    acc = jnp.dot(x_ref[...], w_ref[...], preferred_element_type=jnp.float32)
    o_ref[...] = (acc + b_ref[...]).astype(o_ref.dtype)


def _tile_defaults():
    """Per-generation tile defaults (conservative fallback if detection fails)."""
    tm, tn, vmem = 1024, 1024, 32 * 1024 * 1024
    try:
        kind = jax.devices()[0].device_kind.lower()
    except Exception:
        return tm, tn, vmem
    if ("v6" in kind) or ("v7" in kind):
        # v6e/v7x: 32 MiB scoped-VMEM default + fast HBM -> amortize the
        # ~0.35us/grid-step overhead with ~16-18 MiB double-buffered tiles.
        tm = 2048
    # v5e: keep 1024x1024 (~9 MiB double-buffered); we still raise the scoped
    # limit to 32 MiB (<< 128 MiB physical) for headroom.
    return tm, tn, vmem


def _pallas_patch_matmul(patches, w_mat, bias2d, out_dtype, *, tm=None, tn=None):
    """patches (M, K) @ w_mat (K, E) + bias2d (1, E) -> (M, E) in out_dtype."""
    M, K = patches.shape
    E = w_mat.shape[1]

    d_tm, d_tn, vmem_limit = _tile_defaults()
    tm = d_tm if tm is None else tm
    tn = d_tn if tn is None else tn

    # Sublane tile: multiple of 8, clamped to the problem.  Ragged trailing M
    # blocks are masked by Pallas (no host padding, no post-slice).
    tm = min(tm, _round_up(M, 8))
    # Lane tile: full embed dim whenever it fits (full-extent last dim is
    # legal even when E % 128 != 0 -> no pad-then-slice output copy);
    # otherwise a 128-multiple tile with a masked ragged trailing block.
    tn = E if E <= tn else max(128, (tn // 128) * 128)
    grid = (pl.cdiv(M, tm), pl.cdiv(E, tn))

    in_bytes = patches.dtype.itemsize
    out_bytes = jnp.dtype(out_dtype).itemsize
    cost = pl.CostEstimate(
        flops=2 * M * K * E,
        transcendentals=0,
        bytes_accessed=(M * K * in_bytes + K * E * w_mat.dtype.itemsize
                        + E * 4 + M * E * out_bytes),
    )

    return pl.pallas_call(
        _patch_embed_kernel,
        out_shape=jax.ShapeDtypeStruct((M, E), out_dtype),
        grid=grid,
        in_specs=[
            # x block depends only on i -> re-DMA'd only when i changes.
            pl.BlockSpec((tm, K), lambda i, j: (i, 0)),
            pl.BlockSpec((K, tn), lambda i, j: (0, j)),
            pl.BlockSpec((1, tn), lambda i, j: (0, j)),
        ],
        out_specs=pl.BlockSpec((tm, tn), lambda i, j: (i, j)),
        compiler_params=pltpu.CompilerParams(
            # Patch axis parallel (v7x megacore splits along M); embed axis
            # arbitrary so each core keeps the x-block reuse across j.
            dimension_semantics=("parallel", "arbitrary"),
            vmem_limit_bytes=vmem_limit,
        ),
        cost_estimate=cost,
    )(patches, w_mat, bias2d)


def patch_embed_single_dim(x, weight, bias, *, patch_size, row_wise,
                           compute_dtype=None, out_dtype=None,
                           tm=None, tn=None):
    """Forward pass of PatchEmbedSingleDim (norm_layer=None -> Identity).

    x:      (B, C, H, W)                              NCHW, like PyTorch.
    weight: (E, C, patch_size, 1) if row_wise else (E, C, 1, patch_size)
    bias:   (E,)
    compute_dtype: optional (jnp.bfloat16 recommended when E >> C*patch_size);
                   halves activation-read / relayout HBM bytes; accumulation
                   stays f32.
    out_dtype: optional (jnp.bfloat16 recommended); halves the dominant HBM
               output stream of this write-bound kernel.
    returns (B, num_patches, E)
    """
    B, C, H, W = x.shape
    E = weight.shape[0]
    p = patch_size
    out_dtype = x.dtype if out_dtype is None else out_dtype

    if compute_dtype is not None:
        x = x.astype(compute_dtype)
        weight = weight.astype(compute_dtype)

    # NCHW -> (B*num_patches, C*p) patch rows: one fused XLA reshape+transpose
    # copy (done in compute_dtype, so bf16 halves its traffic too).
    if row_wise:
        assert H % p == 0
        # patch order (h', w) == flatten(2) order of the conv output (B,E,H//p,W)
        xp = x.reshape(B, C, H // p, p, W)
        xp = jnp.transpose(xp, (0, 2, 4, 1, 3))          # (B, H//p, W, C, p)
        num_patches = (H // p) * W
    else:
        assert W % p == 0
        # patch order (h, w') == flatten(2) order of the conv output (B,E,H,W//p)
        xp = x.reshape(B, C, H, W // p, p)
        xp = jnp.transpose(xp, (0, 2, 3, 1, 4))          # (B, H, W//p, C, p)
        num_patches = H * (W // p)

    K = C * p
    patches = xp.reshape(B * num_patches, K)

    # Conv weight (E, C, kh, kw) -> (K, E); feature order (c, ip) matches the
    # patch rows.  No lane padding of E and no post-slice: the kernel writes
    # (M, E) directly with full-extent / masked lane stores.
    w_mat = weight.reshape(E, K).T
    bias2d = bias.astype(jnp.float32).reshape(1, E)

    out = _pallas_patch_matmul(patches, w_mat, bias2d, out_dtype, tm=tm, tn=tn)
    return out.reshape(B, num_patches, E)


def _reference(x, weight, bias, *, patch_size, row_wise):
    """Plain-JAX reference via lax.conv_general_dilated (matches nn.Conv2d)."""
    strides = (patch_size, 1) if row_wise else (1, patch_size)
    y = jax.lax.conv_general_dilated(
        x, weight, window_strides=strides, padding="VALID",
        dimension_numbers=("NCHW", "OIHW", "NCHW"),
    )
    y = y + bias.reshape(1, -1, 1, 1)
    B, E = y.shape[0], y.shape[1]
    return jnp.transpose(y.reshape(B, E, -1), (0, 2, 1))


if __name__ == "__main__":
    B, C, H, W = 2, 4, 16, 16
    patch_size = 4
    embed_dim = 32

    key = jax.random.PRNGKey(0)
    kx, kw, kb = jax.random.split(key, 3)
    x = jax.random.normal(kx, (B, C, H, W), dtype=jnp.float32)
    bias = jax.random.normal(kb, (embed_dim,), dtype=jnp.float32) * 0.05

    for row_wise in (True, False):
        if row_wise:
            w_shape = (embed_dim, C, patch_size, 1)
            n_expected = (H // patch_size) * W
        else:
            w_shape = (embed_dim, C, 1, patch_size)
            n_expected = H * (W // patch_size)
        weight = jax.random.normal(kw, w_shape, dtype=jnp.float32) * 0.05
        ref = _reference(x, weight, bias, patch_size=patch_size,
                         row_wise=row_wise)

        # Exact-precision path (matches the PyTorch module semantics).
        fwd = jax.jit(functools.partial(
            patch_embed_single_dim, patch_size=patch_size, row_wise=row_wise))
        out = jax.block_until_ready(fwd(x, weight, bias))
        assert out.shape == (B, n_expected, embed_dim), out.shape
        assert jnp.allclose(out, ref, atol=1e-4, rtol=1e-4), float(
            jnp.max(jnp.abs(out - ref)))

        # Recommended production path: bf16 activation read + bf16 output
        # (halves both HBM streams of this memory-bound kernel), f32 accumulate.
        fwd_bf16 = jax.jit(functools.partial(
            patch_embed_single_dim, patch_size=patch_size, row_wise=row_wise,
            compute_dtype=jnp.bfloat16, out_dtype=jnp.bfloat16))
        out_bf16 = jax.block_until_ready(fwd_bf16(x, weight, bias))
        assert out_bf16.shape == (B, n_expected, embed_dim), out_bf16.shape
        assert out_bf16.dtype == jnp.bfloat16
        assert jnp.allclose(out_bf16.astype(jnp.float32), ref,
                            atol=5e-2, rtol=5e-2), float(
            jnp.max(jnp.abs(out_bf16.astype(jnp.float32) - ref)))

    print("KERNEL_OK")
</pallas_src>

<mosaic_0001>
module attributes {stable_mosaic.version = 11 : i64} {
  func.func @_patch_embed_kernel(%arg0: i32, %arg1: i32, %arg2: memref<128x16xf32, #tpu.memory_space<vmem>>, %arg3: memref<16x32xf32, #tpu.memory_space<vmem>>, %arg4: memref<1x32xf32, #tpu.memory_space<vmem>>, %arg5: memref<128x32xf32, #tpu.memory_space<vmem>>) attributes {dimension_semantics = [#tpu.dimension_semantics<parallel>, #tpu.dimension_semantics<arbitrary>], iteration_bounds = array<i64: 1, 1>, scalar_prefetch = 0 : i64, scratch_operands = 0 : i64, tpu.core_type = #tpu.core_type<tc>, window_params = [{transform_indices = @transform_0, window_bounds = array<i64: 128, 16>}, {transform_indices = @transform_1, window_bounds = array<i64: 16, 32>}, {transform_indices = @transform_2, window_bounds = array<i64: 1, 32>}, {transform_indices = @transform_3, window_bounds = array<i64: 128, 32>}]} {
    %c0 = arith.constant 0 : index
    %c0_0 = arith.constant 0 : index
    %0 = vector.load %arg2[%c0, %c0_0] : memref<128x16xf32, #tpu.memory_space<vmem>>, vector<128x16xf32>
    %c0_1 = arith.constant 0 : index
    %c0_2 = arith.constant 0 : index
    %1 = vector.load %arg3[%c0_1, %c0_2] : memref<16x32xf32, #tpu.memory_space<vmem>>, vector<16x32xf32>
    %cst = arith.constant dense<0.000000e+00> : vector<128x32xf32>
    %2 = tpu.matmul %0, %1, %cst {dimension_numbers = #tpu.dot_dimension_numbers<[1], [0], [0], [1], [0, 0, 1, 1], [], []>} : vector<128x16xf32>, vector<16x32xf32>, vector<128x32xf32> -> vector<128x32xf32>
    %c0_3 = arith.constant 0 : index
    %c0_4 = arith.constant 0 : index
    %3 = vector.load %arg4[%c0_3, %c0_4] : memref<1x32xf32, #tpu.memory_space<vmem>>, vector<1x32xf32>
    %4 = vector.broadcast %3 : vector<1x32xf32> to vector<128x32xf32>
    %5 = arith.addf %2, %4 : vector<128x32xf32>
    %c0_5 = arith.constant 0 : index
    %c0_6 = arith.constant 0 : index
    %6 = vector.load %arg5[%c0_5, %c0_6] : memref<128x32xf32, #tpu.memory_space<vmem>>, vector<128x32xf32>
    tpu.vector_store %arg5[%c0_5, %c0_6], %5 {strides = array<i32>} : memref<128x32xf32, #tpu.memory_space<vmem>>, vector<128x32xf32>,
    return
  }
  func.func @transform_0(%arg0: i32, %arg1: i32) -> (i32, i32) {
    %c0_i32 = arith.constant 0 : i32
    %c0_i32_0 = arith.constant 0 : i32
    return %arg0, %c0_i32 : i32, i32
  }
  func.func @transform_1(%arg0: i32, %arg1: i32) -> (i32, i32) {
    %c0_i32 = arith.constant 0 : i32
    %c0_i32_0 = arith.constant 0 : i32
    return %c0_i32, %arg1 : i32, i32
  }
  func.func @transform_2(%arg0: i32, %arg1: i32) -> (i32, i32) {
    %c0_i32 = arith.constant 0 : i32
    %c0_i32_0 = arith.constant 0 : i32
    return %c0_i32, %arg1 : i32, i32
  }
  func.func @transform_3(%arg0: i32, %arg1: i32) -> (i32, i32) {
    %c0_i32 = arith.constant 0 : i32
    return %arg0, %arg1 : i32, i32
  }
}

</mosaic_0001>

<bundles_post_ra>
// kernel: patch_embed_single_dim.1
= control target key start
LH: loop header
LB: loop body
LE: loop exit
PB: predicated region body
PF: predicated region fallthrough
CT: control target
= control target key end

     0   :  { %vm39_vm0 = vcmask 130048   ;;  %vm233_vm1 = vcmask 261120   ;;  %s480_s1 = inlined_call_operand.vmem [shape: f32[16,32], index: 1, kind: input, shape index: {}]   ;;  %s481_s0 = inlined_call_operand.vmem [shape: f32[128,16], index: 0, kind: input, shape index: {}]   ;;  %s482_s2 = inlined_call_operand.vmem [shape: f32[1,32], index: 2, kind: input, shape index: {}]   ;;  %s483_s3 = inlined_call_operand.vmem [shape: f32[128,32], index: 3, kind: output, shape index: {}]  }
   0x1   :  { %v30_v0 = vld [vmem:[%s480_s1] sm:$0xff]  ;;  %v31_v1 = vld [vmem:[%s480_s1 + $0x8] sm:$0xff]  ;;  %v16_v7 = vld [vmem:[%s481_s0 + $0x10] sm:$0xff] }
   0x2   :  { %v14_v2 = vld [vmem:[%s481_s0] sm:$0xff]  ;;  %v317_v3 = vpack.c.bf16 %v31_v1, %v30_v0  ;;  %v15_v5 = vld [vmem:[%s481_s0 + $0x8] sm:$0xff]  ;;  %v24_v8 = vld [vmem:[%s481_s0 + $0x50] sm:$0xff] }
   0x3   :  { %293 = vmatprep.mubr.msk.f32.mxu0 %vm39_vm0, %v14_v2  ;;  %v22_v4 = vld [vmem:[%s481_s0 + $0x40] sm:$0xff]  ;;  %v23_v6 = vld [vmem:[%s481_s0 + $0x48] sm:$0xff]  ;;  %v17_v9 = vld [vmem:[%s481_s0 + $0x18] sm:$0xff] }
   0x4   :  { %305 = vmatprep.mubr.msk.f32.mxu1 %vm39_vm0, %v22_v4  ;;  %318 = vmatprep.subr.bf16.mxu0 %v317_v3  ;;  %v25_v10 = vld [vmem:[%s481_s0 + $0x58] sm:$0xff]  ;;  %v18_v11 = vld [vmem:[%s481_s0 + $0x20] sm:$0xff]  ;;  %v19_v13 = vld [vmem:[%s481_s0 + $0x28] sm:$0xff] }
   0x5   :  { %321 = vmatprep.subr.bf16.mxu1 %v317_v3  ;;  %320 = vmatpush3.bf16.msra.mxu0 %v317_v3  ;;  %v26_v12 = vld [vmem:[%s481_s0 + $0x60] sm:$0xff]  ;;  %v27_v14 = vld [vmem:[%s481_s0 + $0x68] sm:$0xff]  ;;  %v20_v15 = vld [vmem:[%s481_s0 + $0x30] sm:$0xff] }
   0x6   :  { %322 = vmatpush3.bf16.msra.mxu1 %v317_v3  ;;  %v28_v16 = vld [vmem:[%s481_s0 + $0x70] sm:$0xff]  ;;  %v21_v17 = vld [vmem:[%s481_s0 + $0x38] sm:$0xff]  ;;  %v254_v19 = vld [vmem:[%s482_s2] ss:$0 sm:$0xff] }
   0x7   :  { %v29_v18 = vld [vmem:[%s481_s0 + $0x78] sm:$0xff] }
   0x8   :  { %294 = vmatmul.mubr.msk.f32.vlgmr.msra.gmra.mrb[0].mxu0 %vm39_vm0, %v15_v5 }
   0x9   :  { %306 = vmatmul.mubr.msk.f32.vlgmr.msra.gmra.mrb[0].mxu1 %vm39_vm0, %v23_v6  ;;  %296 = vmatprep.mubr.msk.f32.mxu0 %vm39_vm0, %v16_v7 }
   0xa   :  { %308 = vmatprep.mubr.msk.f32.mxu1 %vm39_vm0, %v24_v8 }
   0xc   :  { %297 = vmatmul.mubr.msk.f32.gmra.mrb[2].mxu0 %vm39_vm0, %v17_v9 }
   0xd   :  { %309 = vmatmul.mubr.msk.f32.gmra.mrb[2].mxu1 %vm39_vm0, %v25_v10  ;;  %299 = vmatprep.mubr.msk.f32.mxu0 %vm39_vm0, %v18_v11 }
   0xe   :  { %311 = vmatprep.mubr.msk.f32.mxu1 %vm39_vm0, %v26_v12 }
  0x10   :  { %300 = vmatmul.mubr.msk.f32.gmra.mrb[4].mxu0 %vm39_vm0, %v19_v13 }
  0x11   :  { %312 = vmatmul.mubr.msk.f32.gmra.mrb[4].mxu1 %vm39_vm0, %v27_v14  ;;  %302 = vmatprep.mubr.msk.f32.mxu0 %vm39_vm0, %v20_v15 }
  0x12   :  { %314 = vmatprep.mubr.msk.f32.mxu1 %vm39_vm0, %v28_v16 }
  0x14   :  { %303 = vmatmul.mubr.msk.f32.gmra.mrb[6].mxu0 %vm39_vm0, %v21_v17 }
  0x15   :  { %315 = vmatmul.mubr.msk.f32.gmra.mrb[6].mxu1 %vm39_vm0, %v29_v18 }
  0xdb   :  { %v295_v20 = vpop.f32.mrb[0].mxu0 }
  0xdc   :  { %v307_v21 = vpop.f32.mrb[0].mxu1  ;;  %v160_v22 = vadd.f32 %v295_v20, %v254_v19  ;;  %v154_v24 = vpop.f32.mrb[1].mxu0 }
  0xdd   :  { %v200_v23 = vadd.f32 %v307_v21, %v254_v19  ;;  %v194_v25 = vpop.f32.mrb[1].mxu1  ;;  %v155_v26 = vadd.f32 %v254_v19, %v154_v24 }
  0xde   :  { %v195_v27 = vadd.f32 %v254_v19, %v194_v25  ;;  %235 = vst.msk [vmem:[%s483_s3 + $0x8] sm:$0xff] %vm233_vm1, %v160_v22 }
  0xdf   :  { %243 = vst.msk [vmem:[%s483_s3 + $0x48] sm:$0xff] %vm233_vm1, %v200_v23  ;;  %234 = vst.msk [vmem:[%s483_s3] sm:$0xff] %vm233_vm1, %v155_v26  ;;  %v298_v28 = vpop.f32.mrb[2].mxu0 }
  0xe0   :  { %242 = vst.msk [vmem:[%s483_s3 + $0x40] sm:$0xff] %vm233_vm1, %v195_v27  ;;  %v310_v29 = vpop.f32.mrb[2].mxu1  ;;  %v170_v30 = vadd.f32 %v298_v28, %v254_v19  ;;  %v164_v32 = vpop.f32.mrb[3].mxu0 }
  0xe1   :  { %v210_v31 = vadd.f32 %v310_v29, %v254_v19  ;;  %v204_v33 = vpop.f32.mrb[3].mxu1  ;;  %v165_v34 = vadd.f32 %v254_v19, %v164_v32 }
  0xe2   :  { %v205_v35 = vadd.f32 %v254_v19, %v204_v33  ;;  %237 = vst.msk [vmem:[%s483_s3 + $0x18] sm:$0xff] %vm233_vm1, %v170_v30 }
  0xe3   :  { %245 = vst.msk [vmem:[%s483_s3 + $0x58] sm:$0xff] %vm233_vm1, %v210_v31  ;;  %236 = vst.msk [vmem:[%s483_s3 + $0x10] sm:$0xff] %vm233_vm1, %v165_v34  ;;  %v301_v36 = vpop.f32.mrb[4].mxu0 }
  0xe4   :  { %244 = vst.msk [vmem:[%s483_s3 + $0x50] sm:$0xff] %vm233_vm1, %v205_v35  ;;  %v313_v37 = vpop.f32.mrb[4].mxu1  ;;  %v180_v38 = vadd.f32 %v301_v36, %v254_v19  ;;  %v174_v40 = vpop.f32.mrb[5].mxu0 }
  0xe5   :  { %v220_v39 = vadd.f32 %v313_v37, %v254_v19  ;;  %v214_v41 = vpop.f32.mrb[5].mxu1  ;;  %v175_v42 = vadd.f32 %v254_v19, %v174_v40 }
  0xe6   :  { %v215_v43 = vadd.f32 %v254_v19, %v214_v41  ;;  %239 = vst.msk [vmem:[%s483_s3 + $0x28] sm:$0xff] %vm233_vm1, %v180_v38 }
  0xe7   :  { %247 = vst.msk [vmem:[%s483_s3 + $0x68] sm:$0xff] %vm233_vm1, %v220_v39  ;;  %238 = vst.msk [vmem:[%s483_s3 + $0x20] sm:$0xff] %vm233_vm1, %v175_v42  ;;  %v304_v44 = vpop.f32.mrb[6].mxu0 }
  0xe8   :  { %246 = vst.msk [vmem:[%s483_s3 + $0x60] sm:$0xff] %vm233_vm1, %v215_v43  ;;  %v316_v45 = vpop.f32.mrb[6].mxu1  ;;  %v190_v46 = vadd.f32 %v304_v44, %v254_v19  ;;  %v184_v48 = vpop.f32.mrb[7].mxu0 }
  0xe9   :  { %v230_v47 = vadd.f32 %v316_v45, %v254_v19  ;;  %v224_v49 = vpop.f32.mrb[7].mxu1  ;;  %v185_v50 = vadd.f32 %v254_v19, %v184_v48 }
  0xea   :  { %v225_v51 = vadd.f32 %v254_v19, %v224_v49  ;;  %241 = vst.msk [vmem:[%s483_s3 + $0x38] sm:$0xff] %vm233_vm1, %v190_v46 }
  0xeb   :  { %249 = vst.msk [vmem:[%s483_s3 + $0x78] sm:$0xff] %vm233_vm1, %v230_v47  ;;  %240 = vst.msk [vmem:[%s483_s3 + $0x30] sm:$0xff] %vm233_vm1, %v185_v50 }
  0xec   :  { %248 = vst.msk [vmem:[%s483_s3 + $0x70] sm:$0xff] %vm233_vm1, %v225_v51 }

</bundles_post_ra>
